<compile_context>
chip_gen: v6e
topology: v6e:2x2x1
jax: 0.10.0
libtpu: 0.0.40
codegen_flags: <defaults>
</compile_context>

<pallas_src>
import jax
import jax.numpy as jnp
from jax.experimental import pallas as pl
from jax.experimental.pallas import tpu as pltpu


def _se_kernel(x_ref, w1_ref, b1_ref, w2_ref, b2_ref, o_ref):
    # x_ref : (Bt, HW, C)  channels-last block (lane dim = C, sublane dim = HW)
    # w1_ref: (C, Cr)   b1_ref: (1, Cr)
    # w2_ref: (Cr, C)   b2_ref: (1, C)

    # Squeeze: global average pool over the spatial (sublane) axis, in f32.
    s = jnp.mean(x_ref[...].astype(jnp.float32), axis=1)            # (Bt, C)

    # Excitation: Linear -> ReLU -> Linear -> Sigmoid.
    h = jnp.dot(s, w1_ref[...], preferred_element_type=jnp.float32) + b1_ref[...]
    h = jnp.maximum(h, 0.0)                                          # (Bt, Cr)
    g = jnp.dot(h, w2_ref[...], preferred_element_type=jnp.float32) + b2_ref[...]
    g = jax.nn.sigmoid(g)                                            # (Bt, C)

    # Scale: re-read the VMEM ref (no materialized f32 copy held across the
    # matmuls) and broadcast the per-channel gate across sublanes (HW axis).
    o_ref[...] = (x_ref[...] * g.astype(x_ref.dtype)[:, None, :]).astype(o_ref.dtype)


def _pick_bt(B, HW, C, itemsize, target_block_bytes=2 << 20):
    """Batch elements per grid step: ~1-4 MB block, divisor of B, >=2 steps if possible."""
    per_elem = HW * C * itemsize
    bt = max(1, target_block_bytes // per_elem)
    bt = int(min(bt, B))
    if B >= 2:                         # keep >=2 grid steps to feed v7x's 2 TCs
        bt = min(bt, max(1, B // 2))
    while B % bt != 0:                 # exact tiling (no partial blocks)
        bt -= 1
    return bt


def se_layer(x, w1, b1, w2, b2):
    """x: (B, C, H, W). Returns x * sigmoid(fc2(relu(fc1(avgpool(x)))))."""
    B, C, H, W = x.shape
    HW = H * W
    Cr = w1.shape[1]
    itemsize = jnp.dtype(x.dtype).itemsize

    # Channels-last internal layout: lane dim = C (dense), sublane dim = HW.
    x_cl = jnp.transpose(x, (0, 2, 3, 1)).reshape(B, HW, C)
    b1_2d = b1.reshape(1, Cr)
    b2_2d = b2.reshape(1, C)

    Bt = _pick_bt(B, HW, C, itemsize)
    grid = (B // Bt,)

    # VMEM budget: in + out blocks, each double-buffered, plus weights + slack.
    block_bytes = Bt * HW * C * itemsize
    weight_bytes = (C * Cr + Cr + Cr * C + C) * 4
    vmem_limit = int(min(max(4 * block_bytes + weight_bytes + (4 << 20), 8 << 20),
                         48 << 20))
    # TODO(synk): for very large C*HW (block no longer fits VMEM, esp. v7x 64 MiB),
    # fall back to a two-pass pool+excite / scale split instead of one fused pass.

    cost = pl.CostEstimate(
        flops=int(2 * B * C * Cr * 2 + 2 * B * C * HW),
        transcendentals=int(B * C),
        bytes_accessed=int(2 * B * C * HW * itemsize + weight_bytes),
    )

    out_cl = pl.pallas_call(
        _se_kernel,
        out_shape=jax.ShapeDtypeStruct((B, HW, C), x.dtype),
        grid_spec=pltpu.PrefetchScalarGridSpec(
            num_scalar_prefetch=0,
            grid=grid,
            in_specs=[
                pl.BlockSpec((Bt, HW, C), lambda i: (i, 0, 0)),   # x block
                pl.BlockSpec((C, Cr), lambda i: (0, 0)),          # w1 (resident)
                pl.BlockSpec((1, Cr), lambda i: (0, 0)),          # b1
                pl.BlockSpec((Cr, C), lambda i: (0, 0)),          # w2
                pl.BlockSpec((1, C), lambda i: (0, 0)),           # b2
            ],
            out_specs=pl.BlockSpec((Bt, HW, C), lambda i: (i, 0, 0)),
        ),
        compiler_params=pltpu.CompilerParams(
            dimension_semantics=("parallel",),
            vmem_limit_bytes=vmem_limit,
        ),
        cost_estimate=cost,
    )(x_cl, w1, b1_2d, w2, b2_2d)

    return jnp.transpose(out_cl.reshape(B, H, W, C), (0, 3, 1, 2))


def _reference(x, w1, b1, w2, b2):
    # Pure-JAX reference of the PyTorch forward.
    s = jnp.mean(x, axis=(2, 3))                      # (B, C)
    h = jnp.maximum(s @ w1 + b1, 0.0)                 # (B, Cr)
    g = jax.nn.sigmoid(h @ w2 + b2)                   # (B, C)
    return x * g[:, :, None, None]


if __name__ == "__main__":
    B, C, H, W = 2, 16, 8, 8          # in_channels=16, reduction=8 -> hidden=2
    reduction = 8
    Cr = C // reduction

    key = jax.random.PRNGKey(0)
    kx, k1, k2, k3, k4 = jax.random.split(key, 5)

    x = jax.random.normal(kx, (B, C, H, W), dtype=jnp.float32)
    # torch Linear shapes are (out, in) / (out,); stored transposed here for s @ W.
    w1 = jax.random.normal(k1, (C, Cr), dtype=jnp.float32) * 0.1
    b1 = jax.random.normal(k2, (Cr,), dtype=jnp.float32) * 0.1
    w2 = jax.random.normal(k3, (Cr, C), dtype=jnp.float32) * 0.1
    b2 = jax.random.normal(k4, (C,), dtype=jnp.float32) * 0.1

    out = se_layer(x, w1, b1, w2, b2)
    out = jax.block_until_ready(out)

    ref = _reference(x, w1, b1, w2, b2)
    assert out.shape == (B, C, H, W)
    assert jnp.allclose(out, ref, atol=1e-5, rtol=1e-5), "mismatch vs reference"

    print("KERNEL_OK")
</pallas_src>

<mosaic_0001>
module attributes {stable_mosaic.version = 11 : i64} {
  func.func @_se_kernel(%arg0: i32, %arg1: memref<1x64x16xf32, #tpu.memory_space<vmem>>, %arg2: memref<16x2xf32, #tpu.memory_space<vmem>>, %arg3: memref<1x2xf32, #tpu.memory_space<vmem>>, %arg4: memref<2x16xf32, #tpu.memory_space<vmem>>, %arg5: memref<1x16xf32, #tpu.memory_space<vmem>>, %arg6: memref<1x64x16xf32, #tpu.memory_space<vmem>>) attributes {dimension_semantics = [#tpu.dimension_semantics<parallel>], iteration_bounds = array<i64: 2>, scalar_prefetch = 0 : i64, scratch_operands = 0 : i64, tpu.core_type = #tpu.core_type<tc>, window_params = [{transform_indices = @transform_0, window_bounds = array<i64: 1, 64, 16>}, {pipeline_mode = #tpu.pipeline_mode<synchronous>, transform_indices = @transform_1, window_bounds = array<i64: 16, 2>}, {pipeline_mode = #tpu.pipeline_mode<synchronous>, transform_indices = @transform_2, window_bounds = array<i64: 1, 2>}, {pipeline_mode = #tpu.pipeline_mode<synchronous>, transform_indices = @transform_3, window_bounds = array<i64: 2, 16>}, {pipeline_mode = #tpu.pipeline_mode<synchronous>, transform_indices = @transform_4, window_bounds = array<i64: 1, 16>}, {transform_indices = @transform_5, window_bounds = array<i64: 1, 64, 16>}]} {
    %c0 = arith.constant 0 : index
    %c0_0 = arith.constant 0 : index
    %c0_1 = arith.constant 0 : index
    %0 = vector.load %arg1[%c0, %c0_0, %c0_1] : memref<1x64x16xf32, #tpu.memory_space<vmem>>, vector<1x64x16xf32>
    %cst = arith.constant dense<0.000000e+00> : vector<1x16xf32>
    %1 = vector.multi_reduction <add>, %0, %cst [1] : vector<1x64x16xf32> to vector<1x16xf32>
    %cst_2 = arith.constant 6.400000e+01 : f32
    %2 = vector.broadcast %cst_2 : f32 to vector<1x16xf32>
    %3 = arith.divf %1, %2 : vector<1x16xf32>
    %c0_3 = arith.constant 0 : index
    %c0_4 = arith.constant 0 : index
    %4 = vector.load %arg2[%c0_3, %c0_4] : memref<16x2xf32, #tpu.memory_space<vmem>>, vector<16x2xf32>
    %cst_5 = arith.constant dense<0.000000e+00> : vector<1x2xf32>
    %5 = tpu.matmul %3, %4, %cst_5 {dimension_numbers = #tpu.dot_dimension_numbers<[1], [0], [0], [1], [0, 0, 1, 1], [], []>} : vector<1x16xf32>, vector<16x2xf32>, vector<1x2xf32> -> vector<1x2xf32>
    %c0_6 = arith.constant 0 : index
    %c0_7 = arith.constant 0 : index
    %6 = vector.load %arg3[%c0_6, %c0_7] : memref<1x2xf32, #tpu.memory_space<vmem>>, vector<1x2xf32>
    %7 = arith.addf %5, %6 : vector<1x2xf32>
    %cst_8 = arith.constant 0.000000e+00 : f32
    %8 = vector.broadcast %cst_8 : f32 to vector<1x2xf32>
    %9 = arith.maximumf %7, %8 : vector<1x2xf32>
    %c0_9 = arith.constant 0 : index
    %c0_10 = arith.constant 0 : index
    %10 = vector.load %arg4[%c0_9, %c0_10] : memref<2x16xf32, #tpu.memory_space<vmem>>, vector<2x16xf32>
    %cst_11 = arith.constant dense<0.000000e+00> : vector<1x16xf32>
    %11 = tpu.matmul %9, %10, %cst_11 {dimension_numbers = #tpu.dot_dimension_numbers<[1], [0], [0], [1], [0, 0, 1, 1], [], []>} : vector<1x2xf32>, vector<2x16xf32>, vector<1x16xf32> -> vector<1x16xf32>
    %c0_12 = arith.constant 0 : index
    %c0_13 = arith.constant 0 : index
    %12 = vector.load %arg5[%c0_12, %c0_13] : memref<1x16xf32, #tpu.memory_space<vmem>>, vector<1x16xf32>
    %13 = arith.addf %11, %12 : vector<1x16xf32>
    %14 = arith.negf %13 : vector<1x16xf32>
    %15 = math.exp %14 : vector<1x16xf32>
    %cst_14 = arith.constant 1.000000e+00 : f32
    %16 = vector.broadcast %cst_14 : f32 to vector<1x16xf32>
    %17 = arith.addf %16, %15 : vector<1x16xf32>
    %18 = arith.divf %16, %17 : vector<1x16xf32>
    %c0_15 = arith.constant 0 : index
    %c0_16 = arith.constant 0 : index
    %c0_17 = arith.constant 0 : index
    %19 = vector.load %arg1[%c0_15, %c0_16, %c0_17] : memref<1x64x16xf32, #tpu.memory_space<vmem>>, vector<1x64x16xf32>
    %20 = vector.shape_cast %18 : vector<1x16xf32> to vector<1x1x16xf32>
    %21 = vector.broadcast %20 : vector<1x1x16xf32> to vector<1x64x16xf32>
    %22 = arith.mulf %19, %21 : vector<1x64x16xf32>
    %c0_18 = arith.constant 0 : index
    %c0_19 = arith.constant 0 : index
    %c0_20 = arith.constant 0 : index
    %23 = vector.load %arg6[%c0_18, %c0_19, %c0_20] : memref<1x64x16xf32, #tpu.memory_space<vmem>>, vector<1x64x16xf32>
    tpu.vector_store %arg6[%c0_18, %c0_19, %c0_20], %22 {strides = array<i32>} : memref<1x64x16xf32, #tpu.memory_space<vmem>>, vector<1x64x16xf32>,
    return
  }
  func.func @transform_0(%arg0: i32) -> (i32, i32, i32) {
    %c0_i32 = arith.constant 0 : i32
    %c0_i32_0 = arith.constant 0 : i32
    %c0_i32_1 = arith.constant 0 : i32
    return %arg0, %c0_i32, %c0_i32_0 : i32, i32, i32
  }
  func.func @transform_1(%arg0: i32) -> (i32, i32) {
    %c0_i32 = arith.constant 0 : i32
    %c0_i32_0 = arith.constant 0 : i32
    %c0_i32_1 = arith.constant 0 : i32
    return %c0_i32, %c0_i32_0 : i32, i32
  }
  func.func @transform_2(%arg0: i32) -> (i32, i32) {
    %c0_i32 = arith.constant 0 : i32
    %c0_i32_0 = arith.constant 0 : i32
    %c0_i32_1 = arith.constant 0 : i32
    return %c0_i32, %c0_i32_0 : i32, i32
  }
  func.func @transform_3(%arg0: i32) -> (i32, i32) {
    %c0_i32 = arith.constant 0 : i32
    %c0_i32_0 = arith.constant 0 : i32
    %c0_i32_1 = arith.constant 0 : i32
    return %c0_i32, %c0_i32_0 : i32, i32
  }
  func.func @transform_4(%arg0: i32) -> (i32, i32) {
    %c0_i32 = arith.constant 0 : i32
    %c0_i32_0 = arith.constant 0 : i32
    %c0_i32_1 = arith.constant 0 : i32
    return %c0_i32, %c0_i32_0 : i32, i32
  }
  func.func @transform_5(%arg0: i32) -> (i32, i32, i32) {
    %c0_i32 = arith.constant 0 : i32
    %c0_i32_0 = arith.constant 0 : i32
    %c0_i32_1 = arith.constant 0 : i32
    return %arg0, %c0_i32, %c0_i32_0 : i32, i32, i32
  }
}

</mosaic_0001>

<bundles_post_ra>
// kernel: tpu_custom_call.1
= control target key start
LH: loop header
LB: loop body
LE: loop exit
PB: predicated region body
PF: predicated region fallthrough
CT: control target
= control target key end

     0   :  { %s583_s18 = smov 0   ;;  %s639_s0 = inlined_call_operand.vmem [shape: f32[2,64,16], index: 0, kind: input, shape index: {}]   ;;  %s640_s1 = inlined_call_operand.vmem [shape: f32[16,2], index: 1, kind: input, shape index: {}]   ;;  %s641_s2 = inlined_call_operand.vmem [shape: f32[1,2], index: 2, kind: input, shape index: {}]   ;;  %s642_s3 = inlined_call_operand.vmem [shape: f32[2,16], index: 3, kind: input, shape index: {}]   ;;  %s643_s4 = inlined_call_operand.vmem [shape: f32[1,16], index: 4, kind: input, shape index: {}]   ;;  %s644_s5 = inlined_call_operand.vmem [shape: f32[2,64,16], index: 5, kind: output, shape index: {}]  }
   0x1 LB: > { %s495_s19 = sadd.s32 4294967295, %s549_s18   ;;  %p499_p0 = scmp.ge.s32.totalorder %s549_s18, 1  ;;  %s549_s18 = sphi %s583_s18, %s15_s18  }
   0x2   : > { %p187_p1 = scmp.lt.s32.totalorder %s549_s18, 3 }
   0x4   : > { %p188_p2 = pnand %p499_p0, %p187_p1 }
   0x5   : > { %p215_p3 = scmp.lt.s32.totalorder (!%p188_p2), %s495_s19, 1 }
   0x6   : > { %191 = sbr.rel (%p188_p2) target bundleno = 476 (0x1dc), region = 40 }
   0xb   : > { %v258_v0 = vld [vmem:[%s640_s1 + $0x8] sm:$0xff]  ;;  %v551_v1 = vmov 0.0   ;;  %v257_v2 = vld [vmem:[%s640_s1] sm:$0xff]  ;;  %vm552_vm0 = vmmov 0   ;;  %s646_s19 = smov (!%p215_p3, %s495_s19), 1  ;;  %vm233_vm1 = vcmask 130048   ;;  %v420_v46 = vlaneseq }
   0xc   : > { %517 = vmatprep.subr.mxu0 %v551_v1  ;;  %521 = vmatprep.mubr.msk.f32.mxu0 %vm552_vm0, %v551_v1  ;;  %s510_s24 = sshll.u32 %s646_s19, 6  ;;  %v334_v33 = vld [vmem:[%s642_s3] sm:$0x3]  ;;  %vm340_vm2 = vcmask 1041408   ;;  %vm336_vm3 = vcmask 15360  }
   0xd   : > { %518 = vmatpush3.msra.mxu0 %v258_v0  ;;  %524 = vmatprep.subr.mxu1 %v551_v1  ;;  %s219_s27 = scalar_lea.vmem %s639_s0, %s510_s24  ;;  %v259_v34 = vld [vmem:[%s641_s2] sm:$0x1]  ;;  %v421_v47 = vshrl.u32 %v420_v46, 7  ;;  %s224_s11 = scalar_lea.vmem %s644_s5, %s510_s24 }
   0xe   : > { %519 = vmatprep.subr.mxu0 %v551_v1  ;;  %526 = vmatprep.mubr.msk.f32.mxu1 %vm552_vm0, %v551_v1  ;;  %v225_v3 = vld [vmem:[%s219_s27] sm:$0xff]  ;;  %v226_v4 = vld [vmem:[%s219_s27 + $0x8] sm:$0xff]  ;;  %v227_v5 = vld [vmem:[%s219_s27 + $0x10] sm:$0xff] }
   0xf   : > { %520 = vmatpush3.msra.mxu0 %v257_v2  ;;  %v228_v6 = vld [vmem:[%s219_s27 + $0x18] sm:$0xff]  ;;  %v234_v7 = vsel %vm233_vm1, %v225_v3, 0.0  ;;  %v235_v8 = vsel %vm233_vm1, %v226_v4, 0.0  ;;  %v237_v9 = vsel %vm233_vm1, %v227_v5, 0.0  ;;  %v229_v10 = vld [vmem:[%s219_s27 + $0x20] sm:$0xff]  ;;  %v230_v13 = vld [vmem:[%s219_s27 + $0x28] sm:$0xff]  ;;  %525 = vmatpush3.msk.msra.mxu1 %vm340_vm2, %v334_v33 }
  0x10   : > { %v236_v11 = vadd.f32 %v235_v8, %v234_v7  ;;  %v239_v12 = vsel %vm233_vm1, %v228_v6, 0.0  ;;  %v241_v15 = vsel %vm233_vm1, %v229_v10, 0.0  ;;  %v231_v16 = vld [vmem:[%s219_s27 + $0x30] sm:$0xff]  ;;  %v243_v18 = vsel %vm233_vm1, %v230_v13, 0.0  ;;  %v232_v19 = vld [vmem:[%s219_s27 + $0x38] sm:$0xff] }
  0x11   : > { %v245_v21 = vsel %vm233_vm1, %v231_v16, 0.0  ;;  %v247_v23 = vsel %vm233_vm1, %v232_v19, 0.0  ;;  %v335_v39 = vld [vmem:[%s643_s4] sm:$0x1]  ;;  %v422_v48 = vsub.s32 0, %v421_v47 }
  0x12   : > { %v238_v14 = vadd.f32 %v237_v9, %v236_v11 }
  0x14   : > { %v240_v17 = vadd.f32 %v239_v12, %v238_v14 }
  0x16   : > { %v242_v20 = vadd.f32 %v241_v15, %v240_v17 }
  0x18   : > { %v244_v22 = vadd.f32 %v243_v18, %v242_v20 }
  0x1a   : > { %v246_v24 = vadd.f32 %v245_v21, %v244_v22 }
  0x1c   : > { %v248_v25 = vadd.f32 %v247_v23, %v246_v24 }
  0x1e   : > { %v249_v26 = vrot.slane %v248_v25, 4 }
  0x20   : > { %v250_v27 = vadd.f32 %v249_v26, %v248_v25 }
  0x22   : > { %v251_v28 = vrot.slane %v250_v27, 2 }
  0x24   : > { %v252_v29 = vadd.f32 %v251_v28, %v250_v27 }
  0x26   : > { %v253_v30 = vrot.slane %v252_v29, 1 }
  0x28   : > { %v254_v31 = vadd.f32 %v253_v30, %v252_v29 }
  0x2a   : > { %v256_v32 = vmul.f32 0.015625, %v254_v31 }
  0x2c   : > { %522 = vmatmul.mubr.msk.f32.vlgmr.msra.gmra.mxu0 %vm233_vm1, %v256_v32 }
  0xec   : > { %v329_v35 = vpop.f32.mrf.mxu0 }
  0xed   : > { %v330_v36 = vadd.f32 %v329_v35, %v259_v34 }
  0xee   : > { %v523_v37 = vpop.f32.mrf.mxu0 }
  0xef   : > { %v333_v38 = vmax.f32 %v330_v36, 0.0 }
  0xf1   : > { %527 = vmatmul.mubr.msk.f32.vlgmr.msra.gmra.mxu1 %vm336_vm3, %v333_v38 }
 0x1b1   : > { %v410_v40 = vpop.f32.mrf.mxu1 }
 0x1b2   : > { %v411_v41 = vadd.f32 %v410_v40, %v335_v39 }
 0x1b3   : > { %v528_v42 = vpop.f32.mrf.mxu1 }
 0x1b4   : > { %v507_v43 = vmul.f32 -1.442695, %v411_v41 }
 0x1b6   : > { %539 = vpow2.f32 %v507_v43 }
 0x1c3   : > { %v540_v44 = vpop.eup %539 }
 0x1c4   : > { %v417_v45 = vadd.f32 1.0, %v540_v44 }
 0x1c6   : > { %541 = vrcp.f32 %v417_v45 }
 0x1d3   : > { %v542_v49 = vpop.eup %541 }
 0x1d4   : > { %v423_v50 = vrot.slane %v542_v49, %v422_v48 }
 0x1d6   : > { %v424_v51 = vmul.f32 %v423_v50, %v225_v3  ;;  %v425_v52 = vmul.f32 %v423_v50, %v226_v4  ;;  %v426_v53 = vmul.f32 %v423_v50, %v227_v5  ;;  %v427_v54 = vmul.f32 %v423_v50, %v228_v6 }
 0x1d7   : > { %v428_v55 = vmul.f32 %v423_v50, %v229_v10  ;;  %v429_v56 = vmul.f32 %v423_v50, %v230_v13  ;;  %v430_v57 = vmul.f32 %v423_v50, %v231_v16  ;;  %v431_v58 = vmul.f32 %v423_v50, %v232_v19 }
 0x1d8   : > { %432 = vst.msk [vmem:[%s224_s11] sm:$0xff] %vm233_vm1, %v424_v51  ;;  %433 = vst.msk [vmem:[%s224_s11 + $0x8] sm:$0xff] %vm233_vm1, %v425_v52 }
 0x1d9   : > { %434 = vst.msk [vmem:[%s224_s11 + $0x10] sm:$0xff] %vm233_vm1, %v426_v53  ;;  %435 = vst.msk [vmem:[%s224_s11 + $0x18] sm:$0xff] %vm233_vm1, %v427_v54 }
 0x1da   : > { %436 = vst.msk [vmem:[%s224_s11 + $0x20] sm:$0xff] %vm233_vm1, %v428_v55  ;;  %437 = vst.msk [vmem:[%s224_s11 + $0x28] sm:$0xff] %vm233_vm1, %v429_v56 }
 0x1db   : > { %438 = vst.msk [vmem:[%s224_s11 + $0x30] sm:$0xff] %vm233_vm1, %v430_v57  ;;  %439 = vst.msk [vmem:[%s224_s11 + $0x38] sm:$0xff] %vm233_vm1, %v431_v58 }
 0x1dc PF: > { %s15_s18 = sadd.s32 1, %s549_s18  }
 0x1dd   : > { %p12_p4 = scmp.ge.s32.totalorder %s15_s18, 4  }
 0x1df   :  { %14 = sbr.rel (!%p12_p4) target bundleno = 1 (0x1), region = 70 }

</bundles_post_ra>
